<compile_context>
chip_gen: v5e
topology: v5e:2x2
jax: 0.10.0
libtpu: 0.0.40
codegen_flags: <defaults>
</compile_context>

<pallas_src>
import math

import jax
import jax.numpy as jnp
from jax.experimental import pallas as pl
from jax.experimental.pallas import tpu as pltpu

ACT_DTYPE = jnp.bfloat16            # inter-kernel activations (halves HBM bytes)
W_DTYPE = jnp.bfloat16              # MXU weights (f32 accumulation in-kernel)
_LN_EPS = 1e-5                      # torch.nn.LayerNorm default
_VMEM_LIMIT = 32 * 1024 * 1024      # safe on v5e/v6e (128 MiB) and v7x (64 MiB)


# --------------------------------------------------------------------------
# In-kernel math helpers
# --------------------------------------------------------------------------
def _ln(x, g, b, eps=_LN_EPS):
    mean = jnp.mean(x, axis=-1, keepdims=True)
    var = jnp.mean(jnp.square(x - mean), axis=-1, keepdims=True)
    return (x - mean) * jax.lax.rsqrt(var + eps) * g + b


def _gelu(x):
    # tanh approximation -> transcendental goes to the EUP slot
    c = math.sqrt(2.0 / math.pi)
    return 0.5 * x * (1.0 + jnp.tanh(c * (x + 0.044715 * x * x * x)))


def _mm(a, w_bf16, bias=None):
    acc = jnp.dot(a.astype(jnp.bfloat16), w_bf16,
                  preferred_element_type=jnp.float32)
    return acc if bias is None else acc + bias


# --------------------------------------------------------------------------
# Kernel 1: fused transformer encoder (all layers in one pallas_call)
# --------------------------------------------------------------------------
def _make_encoder_kernel(num_heads, n_out):
    def kernel(x_ref, ln1g, ln1b, wqkv, bqkv, wpr, bpr, ln2g, ln2b,
               wf1, bf1, wf2, bf2, lnfg, lnfb, o_ref, h_s):
        l = pl.program_id(1)
        n_layers = pl.num_programs(1)
        S, D = h_s.shape
        dh = D // num_heads
        scale = 1.0 / math.sqrt(dh)

        @pl.when(l == 0)
        def _():
            h_s[...] = x_ref[0].astype(jnp.float32)

        x = h_s[...]                                       # (S, D) f32 residual
        # --- attention ---
        h = _ln(x, ln1g[0], ln1b[0])
        qkv = _mm(h, wqkv[0], bqkv[0])                     # (S, 3D)
        heads = []
        for hi in range(num_heads):
            q = qkv[:, hi * dh:(hi + 1) * dh]
            k = qkv[:, D + hi * dh:D + (hi + 1) * dh]
            v = qkv[:, 2 * D + hi * dh:2 * D + (hi + 1) * dh]
            s = jax.lax.dot_general(
                q.astype(jnp.bfloat16), k.astype(jnp.bfloat16),
                (((1,), (1,)), ((), ())),
                preferred_element_type=jnp.float32) * scale     # (S, S)
            m = jnp.max(s, axis=-1, keepdims=True)
            p = jnp.exp(s - m)
            p = p * pl.reciprocal(jnp.sum(p, axis=-1, keepdims=True), approx=True)
            heads.append(jnp.dot(p.astype(jnp.bfloat16), v.astype(jnp.bfloat16),
                                 preferred_element_type=jnp.float32))
        attn = jnp.concatenate(heads, axis=-1)             # (S, D)
        x = x + _mm(attn, wpr[0], bpr[0])
        # --- MLP ---
        h = _ln(x, ln2g[0], ln2b[0])
        x = x + _mm(_gelu(_mm(h, wf1[0], bf1[0])), wf2[0], bf2[0])
        h_s[...] = x

        @pl.when(l == n_layers - 1)
        def _():
            o_ref[0] = _ln(x[S - n_out:, :], lnfg[0], lnfb[0]).astype(o_ref.dtype)

    return kernel


_ENC_LAYER_KEYS = ("ln1_g", "ln1_b", "w_qkv", "b_qkv", "w_proj", "b_proj",
                   "ln2_g", "ln2_b", "w_fc1", "b_fc1", "w_fc2", "b_fc2")


def encoder_forward(enc_p, tokens, context=None, num_heads=4):
    """Full transformer encoder in one pallas_call; returns last `N` token rows."""
    x = tokens if context is None else jnp.concatenate(
        [context.astype(tokens.dtype), tokens], axis=1)
    B, S, D = x.shape
    N = tokens.shape[1]
    L = enc_p["w_qkv"].shape[0]
    layer_args = [enc_p[k] for k in _ENC_LAYER_KEYS]

    def per_layer(a):
        return pl.BlockSpec((1,) + a.shape[1:], lambda b, l: (l, 0, 0))

    def const(a):
        return pl.BlockSpec((1,) + a.shape[1:], lambda b, l: (0, 0, 0))

    in_specs = ([pl.BlockSpec((1, S, D), lambda b, l: (b, 0, 0))]
                + [per_layer(a) for a in layer_args]
                + [const(enc_p["lnf_g"]), const(enc_p["lnf_b"])])
    return pl.pallas_call(
        _make_encoder_kernel(num_heads, N),
        out_shape=jax.ShapeDtypeStruct((B, N, D), ACT_DTYPE),
        grid_spec=pltpu.PrefetchScalarGridSpec(
            num_scalar_prefetch=0,
            grid=(B, L),
            in_specs=in_specs,
            out_specs=pl.BlockSpec((1, N, D), lambda b, l: (b, 0, 0)),
            scratch_shapes=[pltpu.VMEM((S, D), jnp.float32)]),
        compiler_params=pltpu.CompilerParams(
            dimension_semantics=("parallel", "arbitrary"),
            vmem_limit_bytes=_VMEM_LIMIT),
    )(x, *layer_args, enc_p["lnf_g"], enc_p["lnf_b"])


# --------------------------------------------------------------------------
# Kernel 2: fused diffusion sampling loop (decoder MLP + Euler step per grid step)
# --------------------------------------------------------------------------
def _denoise_kernel(sig_ref, noise_ref, z_ref, mask_ref, temb_ref,
                    wt1, bt1, wt2, bt2, win, bin_, lng, lnb,
                    wf1, bf1, wf2, bf2, o_ref, x_s):
    i = pl.program_id(1)
    n_steps = pl.num_programs(1)

    @pl.when(i == 0)
    def _():
        x_s[...] = noise_ref[0].astype(jnp.float32)

    dt = sig_ref[i + 1] - sig_ref[i]                        # SMEM scalar read
    temb = _mm(temb_ref[0].astype(jnp.float32), wt1[0], bt1[0])
    temb = _mm(_gelu(temb), wt2[0], bt2[0])                 # (1, D)

    x = x_s[...]                                            # (N, pd) f32
    h = _mm(x, win[0], bin_[0]) + z_ref[0].astype(jnp.float32) + temb
    h = _ln(h, lng[0], lnb[0])
    pred = _mm(_gelu(_mm(h, wf1[0], bf1[0])), wf2[0], bf2[0])    # (N, pd)
    x_new = x + dt * pred
    x_s[...] = x_new

    @pl.when(i == n_steps - 1)
    def _():
        o_ref[0] = (x_new * mask_ref[0]).astype(o_ref.dtype)


_DEC_KEYS = ("w_t1", "b_t1", "w_t2", "b_t2", "w_in", "b_in",
             "ln_g", "ln_b", "w_fc1", "b_fc1", "w_fc2", "b_fc2")


def denoise_pallas(dec_p, z, noise_patch, pred_mask, sigmas, temb_table):
    B, N, pd = noise_patch.shape
    n_steps = sigmas.shape[0] - 1
    wargs = [dec_p[k] for k in _DEC_KEYS]

    def per_b(a):
        return pl.BlockSpec((1,) + a.shape[1:], lambda b, i, sig: (b, 0, 0))

    def const(a):
        return pl.BlockSpec((1,) + a.shape[1:], lambda b, i, sig: (0, 0, 0))

    def per_step(a):
        return pl.BlockSpec((1,) + a.shape[1:], lambda b, i, sig: (i, 0, 0))

    in_specs = ([per_b(noise_patch), per_b(z), per_b(pred_mask),
                 per_step(temb_table)] + [const(a) for a in wargs])
    return pl.pallas_call(
        _denoise_kernel,
        out_shape=jax.ShapeDtypeStruct((B, N, pd), jnp.float32),
        grid_spec=pltpu.PrefetchScalarGridSpec(
            num_scalar_prefetch=1,
            grid=(B, n_steps),
            in_specs=in_specs,
            out_specs=pl.BlockSpec((1, N, pd), lambda b, i, sig: (b, 0, 0)),
            scratch_shapes=[pltpu.VMEM((N, pd), jnp.float32)]),
        compiler_params=pltpu.CompilerParams(
            dimension_semantics=("parallel", "arbitrary"),
            vmem_limit_bytes=_VMEM_LIMIT),
    )(sigmas, noise_patch, z, pred_mask, temb_table, *wargs)


# --------------------------------------------------------------------------
# Kernel 3: patch-embed matmul fused with mask-token substitution + pos add
# --------------------------------------------------------------------------
def _embed_kernel(x_ref, w_ref, b_ref, vis_ref, tok_ref, pos_ref, o_ref):
    h = _mm(x_ref[0].astype(jnp.float32), w_ref[...], b_ref[...])   # (N, D)
    vis = vis_ref[0]
    h = vis * h + (1.0 - vis) * tok_ref[...]
    o_ref[0] = (h + pos_ref[0]).astype(o_ref.dtype)


def embed_tokens(x_patch, w, b, vis, tok, pos):
    B, N, pd = x_patch.shape
    D = w.shape[-1]
    return pl.pallas_call(
        _embed_kernel,
        out_shape=jax.ShapeDtypeStruct((B, N, D), ACT_DTYPE),
        grid=(B,),
        in_specs=[pl.BlockSpec((1, N, pd), lambda b: (b, 0, 0)),
                  pl.BlockSpec((pd, D), lambda b: (0, 0)),
                  pl.BlockSpec((1, D), lambda b: (0, 0)),
                  pl.BlockSpec((1, N, 1), lambda b: (b, 0, 0)),
                  pl.BlockSpec((1, D), lambda b: (0, 0)),
                  pl.BlockSpec((1, N, D), lambda b: (0, 0, 0))],
        out_specs=pl.BlockSpec((1, N, D), lambda b: (b, 0, 0)),
        compiler_params=pltpu.CompilerParams(
            dimension_semantics=("parallel",),
            vmem_limit_bytes=_VMEM_LIMIT),
    )(x_patch, w, b, vis, tok, pos)


# --------------------------------------------------------------------------
# Kernel 4: fused LayerNorm + projection (text embedding head)
# --------------------------------------------------------------------------
def _ln_linear_kernel(x_ref, g_ref, b_ref, w_ref, bias_ref, o_ref):
    h = _ln(x_ref[0].astype(jnp.float32), g_ref[...], b_ref[...])
    o_ref[0] = _mm(h, w_ref[...], bias_ref[...]).astype(o_ref.dtype)


def ln_linear(x, g, b, w, bias):
    B, T, D = x.shape
    Dout = w.shape[-1]
    return pl.pallas_call(
        _ln_linear_kernel,
        out_shape=jax.ShapeDtypeStruct((B, T, Dout), ACT_DTYPE),
        grid=(B,),
        in_specs=[pl.BlockSpec((1, T, D), lambda i: (i, 0, 0)),
                  pl.BlockSpec((1, D), lambda i: (0, 0)),
                  pl.BlockSpec((1, D), lambda i: (0, 0)),
                  pl.BlockSpec((D, Dout), lambda i: (0, 0)),
                  pl.BlockSpec((1, Dout), lambda i: (0, 0))],
        out_specs=pl.BlockSpec((1, T, Dout), lambda i: (i, 0, 0)),
        compiler_params=pltpu.CompilerParams(
            dimension_semantics=("parallel",),
            vmem_limit_bytes=_VMEM_LIMIT),
    )(x, g, b, w, bias)


# --------------------------------------------------------------------------
# Glue: patchify / unpatchify / timestep embedding (layout only, no hot math)
# --------------------------------------------------------------------------
def patchify(x, p):
    B, C, H, W = x.shape
    x = x.reshape(B, C, H // p, p, W // p, p)
    x = x.transpose(0, 2, 4, 1, 3, 5)
    return x.reshape(B, (H // p) * (W // p), C * p * p)


def unpatchify(x, p, C, H, W):
    B = x.shape[0]
    x = x.reshape(B, H // p, W // p, C, p, p)
    x = x.transpose(0, 3, 1, 4, 2, 5)
    return x.reshape(B, C, H, W)


def timestep_embedding(t, dim):
    half = dim // 2
    freqs = jnp.exp(-math.log(10000.0) * jnp.arange(half, dtype=jnp.float32) / half)
    args = t.astype(jnp.float32)[:, None] * freqs[None, :]
    return jnp.concatenate([jnp.cos(args), jnp.sin(args)], axis=-1)


# --------------------------------------------------------------------------
# Parameter initialization (deterministic, synthetic)
# --------------------------------------------------------------------------
def _normal(key, shape, scale=0.02, dtype=jnp.float32):
    return (jax.random.normal(key, shape, jnp.float32) * scale).astype(dtype)


def _encoder_params(key, dim, depth, mlp_ratio=4):
    ks = jax.random.split(key, 4)
    hid = mlp_ratio * dim
    f32, ones, zeros = jnp.float32, jnp.ones, jnp.zeros
    return {
        "ln1_g": ones((depth, 1, dim), f32), "ln1_b": zeros((depth, 1, dim), f32),
        "w_qkv": _normal(ks[0], (depth, dim, 3 * dim), dtype=W_DTYPE),
        "b_qkv": zeros((depth, 1, 3 * dim), f32),
        "w_proj": _normal(ks[1], (depth, dim, dim), dtype=W_DTYPE),
        "b_proj": zeros((depth, 1, dim), f32),
        "ln2_g": ones((depth, 1, dim), f32), "ln2_b": zeros((depth, 1, dim), f32),
        "w_fc1": _normal(ks[2], (depth, dim, hid), dtype=W_DTYPE),
        "b_fc1": zeros((depth, 1, hid), f32),
        "w_fc2": _normal(ks[3], (depth, hid, dim), dtype=W_DTYPE),
        "b_fc2": zeros((depth, 1, dim), f32),
        "lnf_g": ones((1, 1, dim), f32), "lnf_b": zeros((1, 1, dim), f32),
    }


def init_params(key, cfg):
    ks = jax.random.split(key, 12)
    D, pd, N = cfg["dim"], cfg["patch_dim"], cfg["num_tokens"]
    f32, ones, zeros = jnp.float32, jnp.ones, jnp.zeros
    return {
        "text_embed": {
            "table": _normal(ks[0], (cfg["vocab"], D)),
            "ln_g": ones((1, D), f32), "ln_b": zeros((1, D), f32),
            "proj_w": _normal(ks[1], (D, D), dtype=W_DTYPE),
            "proj_b": zeros((1, D), f32),
        },
        "image_patch": {"w": _normal(ks[2], (pd, D), dtype=W_DTYPE),
                        "b": zeros((1, D), f32)},
        "video_patch": {"w": _normal(ks[3], (pd, D), dtype=W_DTYPE),
                        "b": zeros((1, D), f32)},
        "image_encoder": _encoder_params(ks[4], D, cfg["depth"]),
        "video_encoder": _encoder_params(ks[5], D, cfg["depth"]),
        "image_decoder": {
            "w_t1": _normal(ks[6], (1, D, D), dtype=W_DTYPE), "b_t1": zeros((1, 1, D), f32),
            "w_t2": _normal(ks[7], (1, D, D), dtype=W_DTYPE), "b_t2": zeros((1, 1, D), f32),
            "w_in": _normal(ks[8], (1, pd, D), dtype=W_DTYPE), "b_in": zeros((1, 1, D), f32),
            "ln_g": ones((1, 1, D), f32), "ln_b": zeros((1, 1, D), f32),
            "w_fc1": _normal(ks[9], (1, D, 4 * D), dtype=W_DTYPE), "b_fc1": zeros((1, 1, 4 * D), f32),
            "w_fc2": _normal(ks[10], (1, 4 * D, pd), dtype=W_DTYPE), "b_fc2": zeros((1, 1, pd), f32),
        },
        "video_pos": {
            "time": _normal(ks[11], (cfg["max_latent_length"], D)),
            "spatial": _normal(jax.random.fold_in(ks[11], 1), (1, N, D)),
        },
        "mask_embed": {
            "mask_token": _normal(jax.random.fold_in(ks[11], 2), (1, D)),
            "bos_token": _normal(jax.random.fold_in(ks[11], 3), (1, D)),
        },
    }


# --------------------------------------------------------------------------
# Transformer3DModel — inference forward path
# --------------------------------------------------------------------------
class Transformer3DModel:
    def __init__(self, cfg, params):
        self.cfg = cfg
        self.params = params
        self.training = False
        self.pipeline_preprocess = lambda inputs: inputs
        self.loss_repeat = 4
        self._sigmas = None
        self._temb_table = None

    # ---- submodules ----
    def text_embed(self, prompt):
        p = self.params["text_embed"]
        emb = jnp.take(p["table"], prompt, axis=0)              # gather (glue)
        return ln_linear(emb, p["ln_g"], p["ln_b"], p["proj_w"], p["proj_b"])

    # ---- preprocess (mirrors Transformer3DModel.preprocess) ----
    def preprocess(self, inputs):
        cfg = self.cfg
        # TODO(synk): guidance_scale > 1 (classifier-free guidance batching) not modeled.
        inputs["c"] = inputs.get("c", [])
        if inputs.get("x", None) is None:
            bsz = inputs.get("batch_size", 1)
            inputs["x"] = jnp.zeros((bsz, cfg["channels"], cfg["size"], cfg["size"]),
                                    jnp.float32)
        if inputs.get("prompt", None) is not None:
            inputs["c"].append(self.text_embed(inputs.pop("prompt")))
        # TODO(synk): motion_embed / label_embed not modeled (module defaults them to None).
        inputs["c"] = (jnp.concatenate(inputs["c"], axis=1)
                       if len(inputs["c"]) > 1 else inputs["c"][0])

    # ---- generate_frame (mirrors Transformer3DModel.generate_frame) ----
    def generate_frame(self, states, inputs):
        cfg, prm = self.cfg, self.params
        c = states["c"]
        B, N, pd = c.shape[0], cfg["num_tokens"], cfg["patch_dim"]
        x_patch = jnp.zeros((B, N, pd), jnp.float32)            # states['x'].zero_()
        order = jax.random.permutation(jax.random.PRNGKey(123), N)
        predicted = jnp.zeros((B, N, 1), jnp.float32)
        zero_pos = jnp.zeros((1, N, cfg["dim"]), jnp.float32)
        start = 0
        for i, num_preds in enumerate(inputs["num_preds"]):
            if num_preds <= 0:
                continue
            ids = order[start:start + num_preds]
            start += num_preds
            pred_mask = jnp.zeros((N,), jnp.float32).at[ids].set(1.0)
            pred_mask = jnp.broadcast_to(pred_mask[None, :, None], (B, N, 1))
            # patch-embed + mask-token substitution (fused kernel)
            z = embed_tokens(x_patch, prm["image_patch"]["w"], prm["image_patch"]["b"],
                             predicted, prm["mask_embed"]["mask_token"], zero_pos)
            # TODO(synk): prev_ids bookkeeping / per-step guidance decay not modeled.
            z = encoder_forward(prm["image_encoder"], z, context=c,
                                num_heads=cfg["heads"])
            noise_key = jax.random.fold_in(inputs["rng"], states["t"] * 1000 + i)
            noise = jax.random.normal(noise_key, (B, N, pd), jnp.float32)
            # full diffusion sampling loop fused into one kernel (mask in epilogue)
            sample = denoise_pallas(prm["image_decoder"], z, noise, pred_mask,
                                    self._sigmas, self._temb_table)
            x_patch = x_patch + sample
            predicted = predicted + pred_mask
        states["x_patch"] = x_patch
        states["x"] = unpatchify(x_patch, cfg["patch"], cfg["channels"],
                                 cfg["size"], cfg["size"])

    # ---- generate_video (mirrors Transformer3DModel.generate_video) ----
    def generate_video(self, inputs):
        cfg, prm = self.cfg, self.params
        T = inputs.get("max_latent_length", 1)
        num_steps = inputs.get("num_diffusion_steps", 25)
        sigmas = jnp.array([1.0 - i / num_steps for i in range(num_steps + 1)],
                           jnp.float32)
        self._sigmas = sigmas
        self._temb_table = timestep_embedding(
            sigmas[:-1] * 1000.0, cfg["dim"]).reshape(num_steps, 1, cfg["dim"])
        states = {"x": inputs["x"]}
        latents = inputs.get("latents", [])
        time_embed = prm["video_pos"]["time"]
        spatial_pos = prm["video_pos"]["spatial"]
        bos = prm["mask_embed"]["bos_token"]
        B = states["x"].shape[0]
        ones_vis = jnp.ones((B, cfg["num_tokens"], 1), jnp.float32)
        zero_tok = jnp.zeros((1, cfg["dim"]), jnp.float32)
        for t in range(T):
            states["t"] = t
            pos = time_embed[t][None, None, :] + spatial_pos     # (1, N, D)
            if t == 0:
                c_tok = (jnp.broadcast_to(bos[None], (B, cfg["num_tokens"], cfg["dim"]))
                         + pos).astype(ACT_DTYPE)
            else:
                c_tok = embed_tokens(states["x_patch"], prm["video_patch"]["w"],
                                     prm["video_patch"]["b"], ones_vis, zero_tok, pos)
            context = inputs["c"] if t == 0 else None
            # TODO(synk): video_encoder kv-cache and mixer (non-Identity) path not modeled.
            states["c"] = encoder_forward(prm["video_encoder"], c_tok, context=context,
                                          num_heads=cfg["heads"])
            self.generate_frame(states, inputs)
            latents.append(states["x"])
        inputs["latents"] = latents

    # ---- forward ----
    def forward(self, inputs):
        self.pipeline_preprocess(inputs)
        self.preprocess(inputs)
        if self.training:
            # TODO(synk): training path (train_video/get_losses) not implemented here.
            raise NotImplementedError
        inputs["latents"] = inputs.pop("latents", [])
        self.generate_video(inputs)
        return {"x": jnp.stack(inputs["latents"], axis=2)}       # (B, C, T, H, W)


# --------------------------------------------------------------------------
if __name__ == "__main__":
    cfg = dict(channels=4, size=16, patch=2, dim=64, heads=4, depth=2,
               vocab=100, text_len=8, max_latent_length=2)
    cfg["patch_dim"] = cfg["channels"] * cfg["patch"] ** 2       # 16
    cfg["num_tokens"] = (cfg["size"] // cfg["patch"]) ** 2       # 64

    key = jax.random.PRNGKey(0)
    pkey, ikey = jax.random.split(key)
    params = init_params(pkey, cfg)
    model = Transformer3DModel(cfg, params)

    prompt = jax.random.randint(jax.random.fold_in(ikey, 0),
                                (1, cfg["text_len"]), 0, cfg["vocab"])
    inputs = {
        "prompt": prompt,
        "batch_size": 1,
        "guidance_scale": 1.0,
        "max_latent_length": cfg["max_latent_length"],
        "num_diffusion_steps": 4,
        "num_preds": [32, 32],
        "rng": jax.random.fold_in(ikey, 1),
    }

    out = model.forward(inputs)
    x = jax.block_until_ready(out["x"])
    assert x.shape == (1, cfg["channels"], cfg["max_latent_length"],
                       cfg["size"], cfg["size"])
    assert bool(jnp.all(jnp.isfinite(x)))
    print("KERNEL_OK")
</pallas_src>

<mosaic_0001>
module attributes {stable_mosaic.version = 11 : i64} {
  func.func @_ln_linear_kernel(%arg0: i32, %arg1: memref<1x8x64xf32, #tpu.memory_space<vmem>>, %arg2: memref<1x64xf32, #tpu.memory_space<vmem>>, %arg3: memref<1x64xf32, #tpu.memory_space<vmem>>, %arg4: memref<64x64xbf16, #tpu.memory_space<vmem>>, %arg5: memref<1x64xf32, #tpu.memory_space<vmem>>, %arg6: memref<1x8x64xbf16, #tpu.memory_space<vmem>>) attributes {dimension_semantics = [#tpu.dimension_semantics<parallel>], iteration_bounds = array<i64: 1>, scalar_prefetch = 0 : i64, scratch_operands = 0 : i64, tpu.core_type = #tpu.core_type<tc>, window_params = [{transform_indices = @transform_0, window_bounds = array<i64: 1, 8, 64>}, {pipeline_mode = #tpu.pipeline_mode<synchronous>, transform_indices = @transform_1, window_bounds = array<i64: 1, 64>}, {pipeline_mode = #tpu.pipeline_mode<synchronous>, transform_indices = @transform_2, window_bounds = array<i64: 1, 64>}, {pipeline_mode = #tpu.pipeline_mode<synchronous>, transform_indices = @transform_3, window_bounds = array<i64: 64, 64>}, {pipeline_mode = #tpu.pipeline_mode<synchronous>, transform_indices = @transform_4, window_bounds = array<i64: 1, 64>}, {transform_indices = @transform_5, window_bounds = array<i64: 1, 8, 64>}]} {
    %c0 = arith.constant 0 : index
    %c0_0 = arith.constant 0 : index
    %c0_1 = arith.constant 0 : index
    %0 = vector.load %arg1[%c0, %c0_0, %c0_1] : memref<1x8x64xf32, #tpu.memory_space<vmem>>, vector<1x8x64xf32>
    %1 = vector.shape_cast %0 : vector<1x8x64xf32> to vector<8x64xf32>
    %c0_2 = arith.constant 0 : index
    %c0_3 = arith.constant 0 : index
    %2 = vector.load %arg2[%c0_2, %c0_3] : memref<1x64xf32, #tpu.memory_space<vmem>>, vector<1x64xf32>
    %c0_4 = arith.constant 0 : index
    %c0_5 = arith.constant 0 : index
    %3 = vector.load %arg3[%c0_4, %c0_5] : memref<1x64xf32, #tpu.memory_space<vmem>>, vector<1x64xf32>
    %cst = arith.constant dense<0.000000e+00> : vector<8xf32>
    %4 = vector.multi_reduction <add>, %1, %cst [1] : vector<8x64xf32> to vector<8xf32>
    %5 = vector.shape_cast %4 : vector<8xf32> to vector<8x1xf32>
    %cst_6 = arith.constant 6.400000e+01 : f32
    %6 = vector.broadcast %cst_6 : f32 to vector<8x1xf32>
    %7 = arith.divf %5, %6 : vector<8x1xf32>
    %8 = vector.broadcast %7 : vector<8x1xf32> to vector<8x64xf32>
    %9 = arith.subf %1, %8 : vector<8x64xf32>
    %10 = arith.mulf %9, %9 : vector<8x64xf32>
    %cst_7 = arith.constant dense<0.000000e+00> : vector<8xf32>
    %11 = vector.multi_reduction <add>, %10, %cst_7 [1] : vector<8x64xf32> to vector<8xf32>
    %12 = vector.shape_cast %11 : vector<8xf32> to vector<8x1xf32>
    %cst_8 = arith.constant 6.400000e+01 : f32
    %13 = vector.broadcast %cst_8 : f32 to vector<8x1xf32>
    %14 = arith.divf %12, %13 : vector<8x1xf32>
    %15 = vector.broadcast %7 : vector<8x1xf32> to vector<8x64xf32>
    %16 = arith.subf %1, %15 : vector<8x64xf32>
    %cst_9 = arith.constant 9.99999974E-6 : f32
    %17 = vector.broadcast %cst_9 : f32 to vector<8x1xf32>
    %18 = arith.addf %14, %17 : vector<8x1xf32>
    %19 = math.rsqrt %18 : vector<8x1xf32>
    %20 = vector.broadcast %19 : vector<8x1xf32> to vector<8x64xf32>
    %21 = arith.mulf %16, %20 : vector<8x64xf32>
    %22 = vector.broadcast %2 : vector<1x64xf32> to vector<8x64xf32>
    %23 = arith.mulf %21, %22 : vector<8x64xf32>
    %24 = vector.broadcast %3 : vector<1x64xf32> to vector<8x64xf32>
    %25 = arith.addf %23, %24 : vector<8x64xf32>
    %c0_10 = arith.constant 0 : index
    %c0_11 = arith.constant 0 : index
    %26 = vector.load %arg4[%c0_10, %c0_11] : memref<64x64xbf16, #tpu.memory_space<vmem>>, vector<64x64xbf16>
    %c0_12 = arith.constant 0 : index
    %c0_13 = arith.constant 0 : index
    %27 = vector.load %arg5[%c0_12, %c0_13] : memref<1x64xf32, #tpu.memory_space<vmem>>, vector<1x64xf32>
    %28 = arith.truncf %25 : vector<8x64xf32> to vector<8x64xbf16>
    %cst_14 = arith.constant dense<0.000000e+00> : vector<8x64xf32>
    %29 = tpu.matmul %28, %26, %cst_14 {dimension_numbers = #tpu.dot_dimension_numbers<[1], [0], [0], [1], [0, 0, 1, 1], [], []>} : vector<8x64xbf16>, vector<64x64xbf16>, vector<8x64xf32> -> vector<8x64xf32>
    %30 = vector.broadcast %27 : vector<1x64xf32> to vector<8x64xf32>
    %31 = arith.addf %29, %30 : vector<8x64xf32>
    %32 = arith.truncf %31 : vector<8x64xf32> to vector<8x64xbf16>
    %c0_15 = arith.constant 0 : index
    %c0_16 = arith.constant 0 : index
    %c0_17 = arith.constant 0 : index
    %33 = vector.load %arg6[%c0_15, %c0_16, %c0_17] : memref<1x8x64xbf16, #tpu.memory_space<vmem>>, vector<1x8x64xbf16>
    %34 = vector.shape_cast %33 : vector<1x8x64xbf16> to vector<8x64xbf16>
    %35 = vector.shape_cast %32 : vector<8x64xbf16> to vector<1x8x64xbf16>
    tpu.vector_store %arg6[%c0_15, %c0_16, %c0_17], %35 {strides = array<i32>} : memref<1x8x64xbf16, #tpu.memory_space<vmem>>, vector<1x8x64xbf16>,
    return
  }
  func.func @transform_0(%arg0: i32) -> (i32, i32, i32) {
    %c0_i32 = arith.constant 0 : i32
    %c0_i32_0 = arith.constant 0 : i32
    %c0_i32_1 = arith.constant 0 : i32
    return %arg0, %c0_i32, %c0_i32_0 : i32, i32, i32
  }
  func.func @transform_1(%arg0: i32) -> (i32, i32) {
    %c0_i32 = arith.constant 0 : i32
    %c0_i32_0 = arith.constant 0 : i32
    %c0_i32_1 = arith.constant 0 : i32
    return %c0_i32, %c0_i32_0 : i32, i32
  }
  func.func @transform_2(%arg0: i32) -> (i32, i32) {
    %c0_i32 = arith.constant 0 : i32
    %c0_i32_0 = arith.constant 0 : i32
    %c0_i32_1 = arith.constant 0 : i32
    return %c0_i32, %c0_i32_0 : i32, i32
  }
  func.func @transform_3(%arg0: i32) -> (i32, i32) {
    %c0_i32 = arith.constant 0 : i32
    %c0_i32_0 = arith.constant 0 : i32
    %c0_i32_1 = arith.constant 0 : i32
    return %c0_i32, %c0_i32_0 : i32, i32
  }
  func.func @transform_4(%arg0: i32) -> (i32, i32) {
    %c0_i32 = arith.constant 0 : i32
    %c0_i32_0 = arith.constant 0 : i32
    %c0_i32_1 = arith.constant 0 : i32
    return %c0_i32, %c0_i32_0 : i32, i32
  }
  func.func @transform_5(%arg0: i32) -> (i32, i32, i32) {
    %c0_i32 = arith.constant 0 : i32
    %c0_i32_0 = arith.constant 0 : i32
    %c0_i32_1 = arith.constant 0 : i32
    return %arg0, %c0_i32, %c0_i32_0 : i32, i32, i32
  }
}

</mosaic_0001>

<bundles_post_ra>
// kernel: tpu_custom_call.1
= control target key start
LH: loop header
LB: loop body
LE: loop exit
PB: predicated region body
PF: predicated region fallthrough
CT: control target
= control target key end

     0   :  { %10 = vsyncpa [#allocation3], 0  ;;  %s375_s0 = inlined_call_operand.hbm [shape: f32[1,8,64], index: 0, kind: input, shape index: {}]   ;;  %s376_s1 = inlined_call_operand.hbm [shape: f32[1,64], index: 1, kind: input, shape index: {}]   ;;  %s377_s2 = inlined_call_operand.vmem [shape: f32[1,64], index: 2, kind: input, shape index: {}]   ;;  %s378_s3 = inlined_call_operand.hbm [shape: bf16[64,64], index: 3, kind: input, shape index: {}]   ;;  %s379_s4 = inlined_call_operand.vmem [shape: f32[1,64], index: 4, kind: input, shape index: {}]   ;;  %s380_s5 = inlined_call_operand.hbm [shape: bf16[1,8,64], index: 5, kind: output, shape index: {}]  }
   0x1   :  { %11 = vsyncpa [#allocation6], 0  ;;  %s29_s20 = sshll.u32 %s376_s1, 4  ;;  %s30_s20 = int_to_ptr.hbm [resolvable:$true] %s29_s20 }
   0x2   :  { %12 = vsyncpa [#allocation4], 0  ;;  %s317_s21 = smov [#allocation5]   ;;  %s18_s25 = sshll.u32 %s375_s0, 4  ;;  %s19_s25 = int_to_ptr.hbm [resolvable:$true] %s18_s25 }
   0x3   :  { %s31_s22 = sshll.u32 %s317_s21, 4  ;;  %s318_s26 = smov [#allocation2]   ;;  %s32_s22 = int_to_ptr.vmem [resolvable:$true] %s31_s22 }
   0x4   :  { %34 = dma.hbm_to_vmem [thread:$0]  %s30_s20, 16, %s32_s22, [#allocation6]  }
   0x5   :  { %s20_s27 = sshll.u32 %s318_s26, 4  ;;  %s41_s30 = sshll.u32 %s378_s3, 4  ;;  %s21_s27 = int_to_ptr.vmem [resolvable:$true] %s20_s27  ;;  %s42_s30 = int_to_ptr.hbm [resolvable:$true] %s41_s30 }
   0x6   :  { %23 = dma.hbm_to_vmem [thread:$0]  %s19_s25, 128, %s21_s27, [#allocation3]  }
   0x7   :  { %s319_s1 = smov [#allocation7]   ;;  %s320_s7 = smov 64  }
   0x8   :  { %s43_s6 = sshll.u32 %s319_s1, 4  ;;  %s321_s8 = smov 4   ;;  %s44_s6 = int_to_ptr.vmem [resolvable:$true] %s43_s6 }
   0x9   :  { %49 = dma.hbm_to_vmem [thread:$0]  %s42_s30, 512, %s44_s6, [#allocation6], %s320_s7, %s320_s7, %s321_s8  }
   0xa   :  { %311 = dma.done.wait [#allocation3], 128  }
   0xb   :  { %312 = vsyncadd [#allocation3], 4294967168 }
   0xc   :  { %313 = dma.done.wait [#allocation6], 528  }
   0xd   :  { %314 = vsyncadd [#allocation6], 4294966768  ;;  %vm68_vm0 = vcmask 523264   ;;  %v65_v0 = vld [vmem:[#allocation2] sm:$0xff]  ;;  %v322_v2 = vmov 64.0   ;;  %v198_v16 = vld [vmem:[#allocation7 + $0x8] sm:$0xff] }
   0xe   :  { %v69_v1 = vsel %vm68_vm0, %v65_v0, 0.0  ;;  %211 = vrcp.f32 %v322_v2  ;;  %v200_v14 = vld [vmem:[#allocation7 + $0x18] sm:$0xff]  ;;  %v199_v15 = vld [vmem:[#allocation7 + $0x10] sm:$0xff]  ;;  %v197_v17 = vld [vmem:[#allocation7] sm:$0xff]  ;;  %s323_s11 = smov [#allocation8]   ;;  %s169_s15 = sshll.u32 %s380_s5, 4  ;;  %s170_s15 = int_to_ptr.hbm [resolvable:$true] %s169_s15 }
   0xf   :  { %70 = vadd.xlane.f32.xlu0 %v69_v1  ;;  %150 = vmatpush.bf16.msra.mxu0 %v200_v14  ;;  %v208_v27 = vld [vmem:[#allocation5] ss:$0 sm:$0xff]  ;;  %v209_v30 = vld [vmem:[%s377_s2] ss:$0 sm:$0xff]  ;;  %s167_s12 = sshll.u32 %s323_s11, 4  ;;  %vm160_vm5 = vcmask 519168   ;;  %s168_s12 = int_to_ptr.vmem [resolvable:$true] %s167_s12 }
  0x10   :  { %v210_v34 = vld [vmem:[%s379_s4] ss:$0 sm:$0xff] }
  0x13   :  { %151 = vmatpush.bf16.msra.mxu0 %v199_v15 }
  0x14   :  { %v212_v3 = vpop.eup %211 }
  0x15   :  { %v73_v4 = vmul.f32 64.0, %v212_v3  ;;  %vm77_vm1 = vweird.f32 %v212_v3 }
  0x17   :  { %v74_v5 = vsub.f32 1.0, %v73_v4  ;;  %152 = vmatpush.bf16.msra.mxu0 %v198_v16 }
  0x19   :  { %v75_v6 = vmul.f32 %v212_v3, %v74_v5 }
  0x1b   :  { %v76_v7 = vadd.f32 %v212_v3, %v75_v6  ;;  %153 = vmatpush.bf16.msra.mxu0 %v197_v17 }
  0x1d   :  { %v78_v8 = vsel %vm77_vm1, %v212_v3, %v76_v7 }
  0x82   :  { %v71_v9 = vpop.xlane.xlu0 %70 }
  0x83   :  { %v79_v10 = vmul.f32 %v78_v8, %v71_v9 }
  0x85   :  { %v80_v11 = vsub.f32 %v65_v0, %v79_v10 }
  0x87   :  { %v81_v12 = vmul.f32 %v80_v11, %v80_v11 }
  0x89   :  { %v82_v13 = vsel %vm68_vm0, %v81_v12, 0.0 }
  0x8a   :  { %83 = vadd.xlane.f32.xlu0 %v82_v13 }
  0xfd   :  { %v84_v18 = vpop.xlane.xlu0 %83 }
  0xfe   :  { %v85_v19 = vmul.f32 %v84_v18, %v78_v8 }
 0x100   :  { %v86_v20 = vadd.f32 1e-05, %v85_v19 }
 0x102   :  { %213 = vrsqrt.f32 %v86_v20  ;;  %vm93_vm3 = vweird.f32 %v86_v20 }
 0x108   :  { %v214_v21 = vpop.eup %213 }
 0x109   :  { %v88_v22 = vmul.f32 %v214_v21, %v86_v20  ;;  %vm94_vm2 = vweird.f32 %v214_v21 }
 0x10a   :  { %vm95_vm4 = vmor %vm93_vm3, %vm94_vm2 }
 0x10b   :  { %v89_v23 = vmul.f32 %v214_v21, %v88_v22 }
 0x10d   :  { %v90_v24 = vmul.f32 0.5, %v89_v23 }
 0x10f   :  { %v91_v25 = vsub.f32 1.5, %v90_v24 }
 0x111   :  { %v92_v26 = vmul.f32 %v214_v21, %v91_v25 }
 0x113   :  { %v96_v28 = vsel %vm95_vm4, %v214_v21, %v92_v26 }
 0x114   :  { %v97_v29 = vmul.f32 %v96_v28, %v80_v11 }
 0x116   :  { %v101_v31 = vmul.f32 %v208_v27, %v97_v29 }
 0x118   :  { %v105_v32 = vadd.f32 %v209_v30, %v101_v31 }
 0x11a   :  { %v115_v33 = vpack.c.bf16 %v105_v32, %v105_v32 }
 0x11c   :  { %196 = vmatmul.msk.bf16.vlgmr.msra.gmra.mxu0 %vm68_vm0, %v115_v33 }
 0x199   :  { %v155_v35 = vpop.f32.mrf.mxu0 }
 0x19a   :  { %v156_v36 = vadd.f32 %v210_v34, %v155_v35 }
 0x19c   :  { %v159_v37 = vpack.c.bf16 %v156_v36, %v156_v36 }
 0x19e   :  { %161 = vst.msk [vmem:[#allocation8] sm:$0xf] %vm160_vm5, %v159_v37 }
 0x19f   :  { %172 = dma.vmem_to_hbm [thread:$0]  %s168_s12, 64, %s170_s15, [#allocation4]  }
 0x1a1   :  { %v157_v38 = vpop.f32.mrf.mxu0 }
 0x1a2   :  { %315 = dma.done.wait [#allocation4], 64  }
 0x1a3   :  { %316 = vsyncadd [#allocation4], 4294967232 }
 0x1a4   :  { %177 = vsyncpa [#allocation3], 1 }
 0x1a5   :  { %178 = vsyncpa [#allocation6], 1 }
 0x1a6   :  { %179 = vsyncpa [#allocation4], 1 }

</bundles_post_ra>
